<compile_context>
chip_gen: v6e
topology: v6e:2x2x1
jax: 0.10.0
libtpu: 0.0.40
codegen_flags: <defaults>
</compile_context>

<pallas_src>
import functools

import jax
import jax.numpy as jnp
from jax.experimental import pallas as pl
from jax.experimental.pallas import tpu as pltpu


def _fused_mlp_kernel(num_layers, *refs):
    """refs = (x_ref, w1_ref, b1_ref, ..., wL_ref, bL_ref, o_ref).

    Hidden layers: Linear + ReLU; final layer: Linear only. All intermediate
    activations stay on-chip — only o_ref is written back to HBM.
    """
    x_ref = refs[0]
    o_ref = refs[-1]
    param_refs = refs[1:-1]

    h = x_ref[...]
    for i in range(num_layers):
        w_ref = param_refs[2 * i]
        b_ref = param_refs[2 * i + 1]
        h = jnp.dot(h, w_ref[...], preferred_element_type=jnp.float32)
        h = h + b_ref[...]  # (1, D_out) broadcasts over batch rows, once per layer
        if i < num_layers - 1:
            h = jnp.maximum(h, 0.0)  # ReLU on the VPU
    o_ref[...] = h.astype(o_ref.dtype)


def fused_mlp_pallas(x, params):
    """x: (B, D_in) f32; params: list of (w: (D_in, D_out), b: (1, D_out))."""
    B, Din = x.shape
    num_layers = len(params)
    Dout_final = params[-1][0].shape[1]

    # Whole-array VMEM blocks (grid-less, single kernel invocation).
    in_specs = [pl.BlockSpec((B, Din), lambda: (0, 0))]
    flat_params = []
    for (w, b) in params:
        di, do = w.shape
        in_specs.append(pl.BlockSpec((di, do), lambda: (0, 0)))
        in_specs.append(pl.BlockSpec((1, do), lambda: (0, 0)))
        flat_params.extend([w, b])

    # Advisory cost estimate for the XLA scheduler.
    flops = sum(2 * B * w.shape[0] * w.shape[1] for (w, _) in params)
    bytes_accessed = (
        x.size * x.dtype.itemsize
        + sum(w.size * w.dtype.itemsize + b.size * b.dtype.itemsize for (w, b) in params)
        + B * Dout_final * x.dtype.itemsize
    )

    return pl.pallas_call(
        functools.partial(_fused_mlp_kernel, num_layers),
        out_shape=jax.ShapeDtypeStruct((B, Dout_final), x.dtype),
        in_specs=in_specs,
        out_specs=pl.BlockSpec((B, Dout_final), lambda: (0, 0)),
        cost_estimate=pl.CostEstimate(
            flops=flops, transcendentals=0, bytes_accessed=bytes_accessed
        ),
        compiler_params=pltpu.CompilerParams(vmem_limit_bytes=32 * 1024 * 1024),
    )(x, *flat_params)


def init_params(layer_dims, key):
    """Deterministic parameter init matching nn.Linear shapes.

    PyTorch stores weight as (out, in); we store the transpose (in, out).
    Uses uniform(-1/sqrt(fan_in), 1/sqrt(fan_in)) like torch's default init.
    """
    params = []
    for i in range(len(layer_dims) - 1):
        d_in, d_out = layer_dims[i], layer_dims[i + 1]
        key, kw, kb = jax.random.split(key, 3)
        bound = 1.0 / (d_in ** 0.5)
        w = jax.random.uniform(kw, (d_in, d_out), jnp.float32, -bound, bound)
        b = jax.random.uniform(kb, (1, d_out), jnp.float32, -bound, bound)
        params.append((w, b))
    return params


@functools.partial(jax.jit, static_argnames=("dropout_rate",))
def feed_forward_nn(x, params, dropout_rate=0.0):
    """Forward pass of FeedForwardNN.

    x: (B, C, H, W) or any (B, ...) — flattened to (B, -1) like x.view(B, -1).
    Hidden layers: Linear + ReLU (+ dropout); output layer: Linear only.
    All layers are fused into a single Pallas kernel.
    """
    # dropout_rate=0.0 (module default) => identity; matches eval semantics.
    # TODO(synk): training-mode dropout (p>0) would need pltpu.prng_* masking.
    del dropout_rate
    B = x.shape[0]
    h = x.reshape((B, -1))
    return fused_mlp_pallas(h, params)


if __name__ == "__main__":
    key = jax.random.PRNGKey(0)
    k_x, k_p = jax.random.split(key)

    # Input consistent with flattening a small NCHW tensor: (2, 4, 16, 16) -> 1024 features.
    x = jax.random.normal(k_x, (2, 4, 16, 16), jnp.float32)
    layer_dims = [4 * 16 * 16, 64, 32, 8]  # two hidden layers + output layer

    params = init_params(layer_dims, k_p)

    out = feed_forward_nn(x, params, dropout_rate=0.0)
    out = jax.block_until_ready(out)

    # Sanity check against a plain-JAX reference.
    h_ref = x.reshape((x.shape[0], -1))
    for (w, b) in params[:-1]:
        h_ref = jnp.maximum(h_ref @ w + b, 0.0)
    ref = h_ref @ params[-1][0] + params[-1][1]
    assert out.shape == (2, 8)
    assert jnp.allclose(out, ref, atol=1e-4, rtol=1e-4)

    print("KERNEL_OK")
</pallas_src>

<mosaic_0001>
module attributes {stable_mosaic.version = 11 : i64} {
  func.func @_fused_mlp_kernel(%arg0: memref<2x1024xf32, #tpu.memory_space<vmem>>, %arg1: memref<1024x64xf32, #tpu.memory_space<vmem>>, %arg2: memref<1x64xf32, #tpu.memory_space<vmem>>, %arg3: memref<64x32xf32, #tpu.memory_space<vmem>>, %arg4: memref<1x32xf32, #tpu.memory_space<vmem>>, %arg5: memref<32x8xf32, #tpu.memory_space<vmem>>, %arg6: memref<1x8xf32, #tpu.memory_space<vmem>>, %arg7: memref<2x8xf32, #tpu.memory_space<vmem>>) attributes {dimension_semantics = [], scalar_prefetch = 0 : i64, scratch_operands = 0 : i64, tpu.core_type = #tpu.core_type<tc>} {
    %c0 = arith.constant 0 : index
    %c0_0 = arith.constant 0 : index
    %0 = vector.load %arg0[%c0, %c0_0] : memref<2x1024xf32, #tpu.memory_space<vmem>>, vector<2x1024xf32>
    %c0_1 = arith.constant 0 : index
    %c0_2 = arith.constant 0 : index
    %1 = vector.load %arg1[%c0_1, %c0_2] : memref<1024x64xf32, #tpu.memory_space<vmem>>, vector<1024x64xf32>
    %cst = arith.constant dense<0.000000e+00> : vector<2x64xf32>
    %2 = tpu.matmul %0, %1, %cst {dimension_numbers = #tpu.dot_dimension_numbers<[1], [0], [0], [1], [0, 0, 1, 1], [], []>} : vector<2x1024xf32>, vector<1024x64xf32>, vector<2x64xf32> -> vector<2x64xf32>
    %c0_3 = arith.constant 0 : index
    %c0_4 = arith.constant 0 : index
    %3 = vector.load %arg2[%c0_3, %c0_4] : memref<1x64xf32, #tpu.memory_space<vmem>>, vector<1x64xf32>
    %4 = vector.broadcast %3 : vector<1x64xf32> to vector<2x64xf32>
    %5 = arith.addf %2, %4 : vector<2x64xf32>
    %cst_5 = arith.constant 0.000000e+00 : f32
    %6 = vector.broadcast %cst_5 : f32 to vector<2x64xf32>
    %7 = arith.maximumf %5, %6 : vector<2x64xf32>
    %c0_6 = arith.constant 0 : index
    %c0_7 = arith.constant 0 : index
    %8 = vector.load %arg3[%c0_6, %c0_7] : memref<64x32xf32, #tpu.memory_space<vmem>>, vector<64x32xf32>
    %cst_8 = arith.constant dense<0.000000e+00> : vector<2x32xf32>
    %9 = tpu.matmul %7, %8, %cst_8 {dimension_numbers = #tpu.dot_dimension_numbers<[1], [0], [0], [1], [0, 0, 1, 1], [], []>} : vector<2x64xf32>, vector<64x32xf32>, vector<2x32xf32> -> vector<2x32xf32>
    %c0_9 = arith.constant 0 : index
    %c0_10 = arith.constant 0 : index
    %10 = vector.load %arg4[%c0_9, %c0_10] : memref<1x32xf32, #tpu.memory_space<vmem>>, vector<1x32xf32>
    %11 = vector.broadcast %10 : vector<1x32xf32> to vector<2x32xf32>
    %12 = arith.addf %9, %11 : vector<2x32xf32>
    %cst_11 = arith.constant 0.000000e+00 : f32
    %13 = vector.broadcast %cst_11 : f32 to vector<2x32xf32>
    %14 = arith.maximumf %12, %13 : vector<2x32xf32>
    %c0_12 = arith.constant 0 : index
    %c0_13 = arith.constant 0 : index
    %15 = vector.load %arg5[%c0_12, %c0_13] : memref<32x8xf32, #tpu.memory_space<vmem>>, vector<32x8xf32>
    %cst_14 = arith.constant dense<0.000000e+00> : vector<2x8xf32>
    %16 = tpu.matmul %14, %15, %cst_14 {dimension_numbers = #tpu.dot_dimension_numbers<[1], [0], [0], [1], [0, 0, 1, 1], [], []>} : vector<2x32xf32>, vector<32x8xf32>, vector<2x8xf32> -> vector<2x8xf32>
    %c0_15 = arith.constant 0 : index
    %c0_16 = arith.constant 0 : index
    %17 = vector.load %arg6[%c0_15, %c0_16] : memref<1x8xf32, #tpu.memory_space<vmem>>, vector<1x8xf32>
    %18 = vector.broadcast %17 : vector<1x8xf32> to vector<2x8xf32>
    %19 = arith.addf %16, %18 : vector<2x8xf32>
    %c0_17 = arith.constant 0 : index
    %c0_18 = arith.constant 0 : index
    %20 = vector.load %arg7[%c0_17, %c0_18] : memref<2x8xf32, #tpu.memory_space<vmem>>, vector<2x8xf32>
    tpu.vector_store %arg7[%c0_17, %c0_18], %19 {strides = array<i32>} : memref<2x8xf32, #tpu.memory_space<vmem>>, vector<2x8xf32>,
    return
  }
}

</mosaic_0001>

<bundles_post_ra>
// kernel: feed_forward_nn.1
= control target key start
LH: loop header
LB: loop body
LE: loop exit
PB: predicated region body
PF: predicated region fallthrough
CT: control target
= control target key end

     0   :  { %v897_v30 = vmov 1983009808   ;;  %v170_v32 = vlaneseq  ;;  %s1385_s0 = inlined_call_operand.vmem [shape: f32[2,1024], index: 0, kind: input, shape index: {}]   ;;  %s1386_s1 = inlined_call_operand.vmem [shape: f32[1024,64], index: 1, kind: input, shape index: {}]   ;;  %s1387_s2 = inlined_call_operand.vmem [shape: f32[1,64], index: 2, kind: input, shape index: {}]   ;;  %s1388_s3 = inlined_call_operand.vmem [shape: f32[64,32], index: 3, kind: input, shape index: {}]   ;;  %s1389_s4 = inlined_call_operand.vmem [shape: f32[1,32], index: 4, kind: input, shape index: {}]   ;;  %s1390_s5 = inlined_call_operand.vmem [shape: f32[32,8], index: 5, kind: input, shape index: {}]   ;;  %s1391_s6 = inlined_call_operand.vmem [shape: f32[1,8], index: 6, kind: input, shape index: {}]   ;;  %s1392_s7 = inlined_call_operand.hbm [shape: f32[2,8], index: 7, kind: output, shape index: {}]  }
   0x1   :  { %v60_v0 = vld [vmem:[%s1386_s1 + $0xf8] sm:$0xff]  ;;  %v59_v4 = vld [vmem:[%s1386_s1 + $0xf0] sm:$0xff]  ;;  %v58_v8 = vld [vmem:[%s1386_s1 + $0xe8] sm:$0xff]  ;;  %v168_v31 = vunpack.c.l.s4 %v897_v30 }
   0x2   :  { %v92_v1 = vld [vmem:[%s1386_s1 + $0x1f8] sm:$0xff]  ;;  %685 = vmatprep.subr.mxu0 %v60_v0  ;;  %v91_v5 = vld [vmem:[%s1386_s1 + $0x1f0] sm:$0xff]  ;;  %v90_v9 = vld [vmem:[%s1386_s1 + $0x1e8] sm:$0xff]  ;;  %v171_v42 = vshrl.u32 %v170_v32, 7 }
   0x3   :  { %v44_v2 = vld [vmem:[%s1386_s1 + $0x78] sm:$0xff]  ;;  %720 = vmatprep.subr.mxu1 %v92_v1  ;;  %v43_v6 = vld [vmem:[%s1386_s1 + $0x70] sm:$0xff]  ;;  %v42_v10 = vld [vmem:[%s1386_s1 + $0x68] sm:$0xff]  ;;  %v169_v41 = vunpack.c.0.s8 %v168_v31 }
   0x4   :  { %v76_v3 = vld [vmem:[%s1386_s1 + $0x178] sm:$0xff]  ;;  %686 = vmatpush3.msra.mxu0 %v44_v2  ;;  %v75_v7 = vld [vmem:[%s1386_s1 + $0x170] sm:$0xff]  ;;  %v74_v11 = vld [vmem:[%s1386_s1 + $0x168] sm:$0xff] }
   0x5   :  { %721 = vmatpush3.msra.mxu1 %v76_v3  ;;  %687 = vmatprep.subr.mxu0 %v59_v4  ;;  %v57_v12 = vld [vmem:[%s1386_s1 + $0xe0] sm:$0xff]  ;;  %v56_v16 = vld [vmem:[%s1386_s1 + $0xd8] sm:$0xff]  ;;  %v55_v20 = vld [vmem:[%s1386_s1 + $0xd0] sm:$0xff]  ;;  %v1079_v51 = vsub.s32 %v169_v41, %v171_v42 }
   0x6   :  { %722 = vmatprep.subr.mxu1 %v91_v5  ;;  %688 = vmatpush3.msra.mxu0 %v43_v6  ;;  %v89_v13 = vld [vmem:[%s1386_s1 + $0x1e0] sm:$0xff]  ;;  %v88_v17 = vld [vmem:[%s1386_s1 + $0x1d8] sm:$0xff]  ;;  %v87_v21 = vld [vmem:[%s1386_s1 + $0x1d0] sm:$0xff] }
   0x7   :  { %723 = vmatpush3.msra.mxu1 %v75_v7  ;;  %689 = vmatprep.subr.mxu0 %v58_v8  ;;  %v41_v14 = vld [vmem:[%s1386_s1 + $0x60] sm:$0xff]  ;;  %v40_v18 = vld [vmem:[%s1386_s1 + $0x58] sm:$0xff]  ;;  %v39_v22 = vld [vmem:[%s1386_s1 + $0x50] sm:$0xff] }
   0x8   :  { %724 = vmatprep.subr.mxu1 %v90_v9  ;;  %v73_v15 = vld [vmem:[%s1386_s1 + $0x160] sm:$0xff]  ;;  %690 = vmatpush3.msra.mxu0 %v42_v10  ;;  %v72_v19 = vld [vmem:[%s1386_s1 + $0x158] sm:$0xff]  ;;  %v71_v23 = vld [vmem:[%s1386_s1 + $0x150] sm:$0xff] }
   0x9   :  { %725 = vmatpush3.msra.mxu1 %v74_v11  ;;  %691 = vmatprep.subr.mxu0 %v57_v12  ;;  %v54_v24 = vld [vmem:[%s1386_s1 + $0xc8] sm:$0xff]  ;;  %v53_v28 = vld [vmem:[%s1386_s1 + $0xc0] sm:$0xff]  ;;  %v52_v35 = vld [vmem:[%s1386_s1 + $0xb8] sm:$0xff] }
   0xa   :  { %726 = vmatprep.subr.mxu1 %v89_v13  ;;  %692 = vmatpush3.msra.mxu0 %v41_v14  ;;  %v86_v25 = vld [vmem:[%s1386_s1 + $0x1c8] sm:$0xff]  ;;  %v85_v29 = vld [vmem:[%s1386_s1 + $0x1c0] sm:$0xff]  ;;  %v84_v36 = vld [vmem:[%s1386_s1 + $0x1b8] sm:$0xff] }
   0xb   :  { %727 = vmatpush3.msra.mxu1 %v73_v15  ;;  %693 = vmatprep.subr.mxu0 %v56_v16  ;;  %v38_v26 = vld [vmem:[%s1386_s1 + $0x48] sm:$0xff]  ;;  %v37_v33 = vld [vmem:[%s1386_s1 + $0x40] sm:$0xff]  ;;  %v36_v37 = vld [vmem:[%s1386_s1 + $0x38] sm:$0xff] }
   0xc   :  { %728 = vmatprep.subr.mxu1 %v88_v17  ;;  %694 = vmatpush3.msra.mxu0 %v40_v18  ;;  %v70_v27 = vld [vmem:[%s1386_s1 + $0x148] sm:$0xff]  ;;  %v69_v34 = vld [vmem:[%s1386_s1 + $0x140] sm:$0xff]  ;;  %v68_v38 = vld [vmem:[%s1386_s1 + $0x138] sm:$0xff] }
   0xd   :  { %729 = vmatpush3.msra.mxu1 %v72_v19  ;;  %695 = vmatprep.subr.mxu0 %v55_v20  ;;  %v51_v39 = vld [vmem:[%s1386_s1 + $0xb0] sm:$0xff]  ;;  %v50_v45 = vld [vmem:[%s1386_s1 + $0xa8] sm:$0xff]  ;;  %v49_v49 = vld [vmem:[%s1386_s1 + $0xa0] sm:$0xff] }
   0xe   :  { %730 = vmatprep.subr.mxu1 %v87_v21  ;;  %696 = vmatpush3.msra.mxu0 %v39_v22  ;;  %v83_v40 = vld [vmem:[%s1386_s1 + $0x1b0] sm:$0xff]  ;;  %v82_v46 = vld [vmem:[%s1386_s1 + $0x1a8] sm:$0xff]  ;;  %v81_v50 = vld [vmem:[%s1386_s1 + $0x1a0] sm:$0xff] }
   0xf   :  { %731 = vmatpush3.msra.mxu1 %v71_v23  ;;  %697 = vmatprep.subr.mxu0 %v54_v24  ;;  %v35_v43 = vld [vmem:[%s1386_s1 + $0x30] sm:$0xff]  ;;  %v34_v47 = vld [vmem:[%s1386_s1 + $0x28] sm:$0xff]  ;;  %v33_v52 = vld [vmem:[%s1386_s1 + $0x20] sm:$0xff] }
  0x10   :  { %732 = vmatprep.subr.mxu1 %v86_v25  ;;  %698 = vmatpush3.msra.mxu0 %v38_v26  ;;  %v67_v44 = vld [vmem:[%s1386_s1 + $0x130] sm:$0xff]  ;;  %v66_v48 = vld [vmem:[%s1386_s1 + $0x128] sm:$0xff]  ;;  %v65_v53 = vld [vmem:[%s1386_s1 + $0x120] sm:$0xff] }
  0x11   :  { %733 = vmatpush3.msra.mxu1 %v70_v27  ;;  %699 = vmatprep.subr.mxu0 %v53_v28  ;;  %v27_v54 = vld [vmem:[%s1385_s0] sm:$0xff]  ;;  %v48_v55 = vld [vmem:[%s1386_s1 + $0x98] sm:$0xff]  ;;  %v47_v60 = vld [vmem:[%s1386_s1 + $0x90] sm:$0xff] }
  0x12   :  { %734 = vmatprep.subr.mxu1 %v85_v29  ;;  %700 = vmatpush3.msra.mxu0 %v37_v33  ;;  %v80_v56 = vld [vmem:[%s1386_s1 + $0x198] sm:$0xff]  ;;  %v166_v57 = vcombine.high %v27_v54, %v27_v54  ;;  %v79_v61 = vld [vmem:[%s1386_s1 + $0x190] sm:$0xff]  ;;  %v173_v62 = vrot.slane %v27_v54, %v1079_v51  ;;  %v46_v1 = vld [vmem:[%s1386_s1 + $0x88] sm:$0xff] }
  0x13   :  { %735 = vmatpush3.msra.mxu1 %v69_v34  ;;  %701 = vmatprep.subr.mxu0 %v52_v35  ;;  %v32_v58 = vld [vmem:[%s1386_s1 + $0x18] sm:$0xff]  ;;  %v31_v63 = vld [vmem:[%s1386_s1 + $0x10] sm:$0xff]  ;;  %v78_v2 = vld [vmem:[%s1386_s1 + $0x188] sm:$0xff] }
  0x14   :  { %736 = vmatprep.subr.mxu1 %v84_v36  ;;  %702 = vmatpush3.msra.mxu0 %v36_v37  ;;  %v64_v59 = vld [vmem:[%s1386_s1 + $0x118] sm:$0xff]  ;;  %v63_v0 = vld [vmem:[%s1386_s1 + $0x110] sm:$0xff]  ;;  %v180_v3 = vrot.slane %v166_v57, %v1079_v51  ;;  %v30_v4 = vld [vmem:[%s1386_s1 + $0x8] sm:$0xff]  ;;  %v181_v8 = vcombine.high %v173_v62, %v173_v62 }
  0x15   :  { %737 = vmatpush3.msra.mxu1 %v68_v38  ;;  %703 = vmatprep.subr.mxu0 %v51_v39  ;;  %v62_v5 = vld [vmem:[%s1386_s1 + $0x108] sm:$0xff]  ;;  %v45_v6 = vld [vmem:[%s1386_s1 + $0x80] sm:$0xff]  ;;  %v124_v12 = vld [vmem:[%s1386_s1 + $0x2f8] sm:$0xff] }
  0x16   :  { %738 = vmatprep.subr.mxu1 %v83_v40  ;;  %704 = vmatpush3.msra.mxu0 %v35_v43  ;;  %v77_v7 = vld [vmem:[%s1386_s1 + $0x180] sm:$0xff]  ;;  %v182_v11 = vcombine.high %v180_v3, %v180_v3  ;;  %v156_v13 = vld [vmem:[%s1386_s1 + $0x3f8] sm:$0xff]  ;;  %v123_v16 = vld [vmem:[%s1386_s1 + $0x2f0] sm:$0xff] }
  0x17   :  { %739 = vmatpush3.msra.mxu1 %v67_v44  ;;  %705 = vmatprep.subr.mxu0 %v50_v45  ;;  %v29_v9 = vld [vmem:[%s1386_s1] sm:$0xff]  ;;  %v108_v14 = vld [vmem:[%s1386_s1 + $0x278] sm:$0xff]  ;;  %v155_v17 = vld [vmem:[%s1386_s1 + $0x3f0] sm:$0xff] }
  0x18   :  { %740 = vmatprep.subr.mxu1 %v82_v46  ;;  %706 = vmatpush3.msra.mxu0 %v34_v47  ;;  %v61_v10 = vld [vmem:[%s1386_s1 + $0x100] sm:$0xff]  ;;  %v140_v15 = vld [vmem:[%s1386_s1 + $0x378] sm:$0xff]  ;;  %v107_v18 = vld [vmem:[%s1386_s1 + $0x270] sm:$0xff] }
  0x19   :  { %741 = vmatpush3.msra.mxu1 %v66_v48  ;;  %707 = vmatprep.subr.mxu0 %v49_v49  ;;  %v139_v19 = vld [vmem:[%s1386_s1 + $0x370] sm:$0xff]  ;;  %v122_v20 = vld [vmem:[%s1386_s1 + $0x2e8] sm:$0xff]  ;;  %v121_v24 = vld [vmem:[%s1386_s1 + $0x2e0] sm:$0xff] }
  0x1a   :  { %742 = vmatprep.subr.mxu1 %v81_v50  ;;  %708 = vmatpush3.msra.mxu0 %v33_v52  ;;  %v154_v21 = vld [vmem:[%s1386_s1 + $0x3e8] sm:$0xff]  ;;  %v153_v25 = vld [vmem:[%s1386_s1 + $0x3e0] sm:$0xff]  ;;  %v120_v28 = vld [vmem:[%s1386_s1 + $0x2d8] sm:$0xff] }
  0x1b   :  { %743 = vmatpush3.msra.mxu1 %v65_v53  ;;  %709 = vmatprep.subr.mxu0 %v48_v55  ;;  %v106_v22 = vld [vmem:[%s1386_s1 + $0x268] sm:$0xff]  ;;  %v105_v26 = vld [vmem:[%s1386_s1 + $0x260] sm:$0xff]  ;;  %v152_v29 = vld [vmem:[%s1386_s1 + $0x3d8] sm:$0xff] }
  0x1c   :  { %744 = vmatprep.subr.mxu1 %v80_v56  ;;  %710 = vmatpush3.msra.mxu0 %v32_v58  ;;  %v138_v23 = vld [vmem:[%s1386_s1 + $0x368] sm:$0xff]  ;;  %v137_v27 = vld [vmem:[%s1386_s1 + $0x360] sm:$0xff]  ;;  %v104_v30 = vld [vmem:[%s1386_s1 + $0x258] sm:$0xff] }
  0x1d   :  { %745 = vmatpush3.msra.mxu1 %v64_v59  ;;  %711 = vmatprep.subr.mxu0 %v47_v60  ;;  %v136_v31 = vld [vmem:[%s1386_s1 + $0x358] sm:$0xff]  ;;  %v119_v32 = vld [vmem:[%s1386_s1 + $0x2d0] sm:$0xff] }
  0x1e   :  { %746 = vmatprep.subr.mxu1 %v79_v61  ;;  %712 = vmatpush3.msra.mxu0 %v31_v63  ;;  %v151_v33 = vld [vmem:[%s1386_s1 + $0x3d0] sm:$0xff] }
  0x1f   :  { %747 = vmatpush3.msra.mxu1 %v63_v0  ;;  %713 = vmatprep.subr.mxu0 %v46_v1  ;;  %v103_v34 = vld [vmem:[%s1386_s1 + $0x250] sm:$0xff] }
  0x20   :  { %748 = vmatprep.subr.mxu1 %v78_v2  ;;  %714 = vmatpush3.msra.mxu0 %v30_v4  ;;  %v135_v35 = vld [vmem:[%s1386_s1 + $0x350] sm:$0xff] }
  0x21   :  { %749 = vmatpush3.msra.mxu1 %v62_v5  ;;  %715 = vmatprep.subr.mxu0 %v45_v6 }
  0x22   :  { %750 = vmatprep.subr.mxu1 %v77_v7  ;;  %716 = vmatpush3.msra.mxu0 %v29_v9 }
  0x23   :  { %272 = vmatprep.mubr.f32.mxu0 %v181_v8  ;;  %751 = vmatpush3.msra.mxu1 %v61_v10 }
  0x24   :  { %273 = vmatmul.mubr.f32.vlgmr.msra.gmra.mxu0 %v173_v62  ;;  %342 = vmatprep.mubr.f32.mxu1 %v182_v11 }
  0x25   :  { %755 = vmatprep.subr.mxu0 %v124_v12  ;;  %790 = vmatprep.subr.mxu1 %v156_v13 }
  0x26   :  { %343 = vmatmul.mubr.f32.vlgmr.msra.gmra.mxu1 %v180_v3  ;;  %756 = vmatpush3.msra.mxu0 %v108_v14 }
  0x27   :  { %791 = vmatpush3.msra.mxu1 %v140_v15  ;;  %757 = vmatprep.subr.mxu0 %v123_v16 }
  0x28   :  { %792 = vmatprep.subr.mxu1 %v155_v17  ;;  %758 = vmatpush3.msra.mxu0 %v107_v18 }
  0x29   :  { %793 = vmatpush3.msra.mxu1 %v139_v19  ;;  %759 = vmatprep.subr.mxu0 %v122_v20 }
  0x2a   :  { %794 = vmatprep.subr.mxu1 %v154_v21  ;;  %760 = vmatpush3.msra.mxu0 %v106_v22 }
  0x2b   :  { %795 = vmatpush3.msra.mxu1 %v138_v23  ;;  %761 = vmatprep.subr.mxu0 %v121_v24 }
  0x2c   :  { %796 = vmatprep.subr.mxu1 %v153_v25  ;;  %762 = vmatpush3.msra.mxu0 %v105_v26 }
  0x2d   :  { %797 = vmatpush3.msra.mxu1 %v137_v27  ;;  %763 = vmatprep.subr.mxu0 %v120_v28 }
  0x2e   :  { %798 = vmatprep.subr.mxu1 %v152_v29 }
  0x2f   :  { %12 = vsyncpa [#allocation3], 0  ;;  %764 = vmatpush3.msra.mxu0 %v104_v30  ;;  %799 = vmatpush3.msra.mxu1 %v136_v31  ;;  %v118_v36 = vld [vmem:[%s1386_s1 + $0x2c8] sm:$0xff]  ;;  %v117_v40 = vld [vmem:[%s1386_s1 + $0x2c0] sm:$0xff]  ;;  %v898_v19 = vmov 0.0   ;;  %vm899_vm0 = vmmov 0  }
  0x30   :  { %v150_v37 = vld [vmem:[%s1386_s1 + $0x3c8] sm:$0xff]  ;;  %765 = vmatprep.subr.mxu0 %v119_v32  ;;  %800 = vmatprep.subr.mxu1 %v151_v33  ;;  %v149_v41 = vld [vmem:[%s1386_s1 + $0x3c0] sm:$0xff]  ;;  %v116_v44 = vld [vmem:[%s1386_s1 + $0x2b8] sm:$0xff]  ;;  %vm504_vm1 = vcmask 523264   ;;  %vm590_vm2 = vcmask 261120   ;;  %s900_s9 = smov [#allocation2]  }
  0x31   :  { %v102_v38 = vld [vmem:[%s1386_s1 + $0x248] sm:$0xff]  ;;  %766 = vmatpush3.msra.mxu0 %v103_v34  ;;  %801 = vmatpush3.msra.mxu1 %v135_v35  ;;  %v101_v42 = vld [vmem:[%s1386_s1 + $0x240] sm:$0xff]  ;;  %v148_v45 = vld [vmem:[%s1386_s1 + $0x3b8] sm:$0xff]  ;;  %vm664_vm3 = vcmask 58368  }
  0x32   :  { %v134_v39 = vld [vmem:[%s1386_s1 + $0x348] sm:$0xff]  ;;  %767 = vmatprep.subr.mxu0 %v118_v36  ;;  %802 = vmatprep.subr.mxu1 %v150_v37  ;;  %v133_v43 = vld [vmem:[%s1386_s1 + $0x340] sm:$0xff]  ;;  %v100_v46 = vld [vmem:[%s1386_s1 + $0x238] sm:$0xff] }
  0x33   :  { %768 = vmatpush3.msra.mxu0 %v102_v38  ;;  %803 = vmatpush3.msra.mxu1 %v134_v39  ;;  %v132_v47 = vld [vmem:[%s1386_s1 + $0x338] sm:$0xff]  ;;  %v115_v48 = vld [vmem:[%s1386_s1 + $0x2b0] sm:$0xff]  ;;  %v114_v53 = vld [vmem:[%s1386_s1 + $0x2a8] sm:$0xff] }
  0x34   :  { %769 = vmatprep.subr.mxu0 %v117_v40  ;;  %804 = vmatprep.subr.mxu1 %v149_v41  ;;  %v147_v49 = vld [vmem:[%s1386_s1 + $0x3b0] sm:$0xff]  ;;  %v146_v54 = vld [vmem:[%s1386_s1 + $0x3a8] sm:$0xff]  ;;  %v113_v58 = vld [vmem:[%s1386_s1 + $0x2a0] sm:$0xff] }
  0x35   :  { %770 = vmatpush3.msra.mxu0 %v101_v42  ;;  %805 = vmatpush3.msra.mxu1 %v133_v43  ;;  %v99_v50 = vld [vmem:[%s1386_s1 + $0x230] sm:$0xff]  ;;  %v28_v55 = vld [vmem:[%s1385_s0 + $0x8] sm:$0xff]  ;;  %v145_v59 = vld [vmem:[%s1386_s1 + $0x3a0] sm:$0xff] }
  0x36   :  { %771 = vmatprep.subr.mxu0 %v116_v44  ;;  %806 = vmatprep.subr.mxu1 %v148_v45  ;;  %v131_v52 = vld [vmem:[%s1386_s1 + $0x330] sm:$0xff]  ;;  %v98_v56 = vld [vmem:[%s1386_s1 + $0x228] sm:$0xff]  ;;  %v97_v60 = vld [vmem:[%s1386_s1 + $0x220] sm:$0xff]  ;;  %v183_v62 = vcombine.high %v28_v55, %v28_v55  ;;  %v190_v5 = vrot.slane %v28_v55, %v1079_v51 }
  0x37   :  { %772 = vmatpush3.msra.mxu0 %v100_v46  ;;  %807 = vmatpush3.msra.mxu1 %v132_v47  ;;  %v130_v57 = vld [vmem:[%s1386_s1 + $0x328] sm:$0xff]  ;;  %v129_v61 = vld [vmem:[%s1386_s1 + $0x320] sm:$0xff]  ;;  %v112_v63 = vld [vmem:[%s1386_s1 + $0x298] sm:$0xff] }
  0x38   :  { %773 = vmatprep.subr.mxu0 %v115_v48  ;;  %808 = vmatprep.subr.mxu1 %v147_v49  ;;  %v144_v0 = vld [vmem:[%s1386_s1 + $0x398] sm:$0xff]  ;;  %v111_v3 = vld [vmem:[%s1386_s1 + $0x290] sm:$0xff]  ;;  %v197_v8 = vrot.slane %v183_v62, %v1079_v51  ;;  %v110_v9 = vld [vmem:[%s1386_s1 + $0x288] sm:$0xff]  ;;  %v198_v14 = vcombine.high %v190_v5, %v190_v5 }
  0x39   :  { %774 = vmatpush3.msra.mxu0 %v99_v50  ;;  %809 = vmatpush3.msra.mxu1 %v131_v52  ;;  %v96_v1 = vld [vmem:[%s1386_s1 + $0x218] sm:$0xff]  ;;  %v143_v4 = vld [vmem:[%s1386_s1 + $0x390] sm:$0xff]  ;;  %v142_v10 = vld [vmem:[%s1386_s1 + $0x388] sm:$0xff] }
  0x3a   :  { %775 = vmatprep.subr.mxu0 %v114_v53  ;;  %810 = vmatprep.subr.mxu1 %v146_v54  ;;  %v128_v2 = vld [vmem:[%s1386_s1 + $0x318] sm:$0xff]  ;;  %v95_v6 = vld [vmem:[%s1386_s1 + $0x210] sm:$0xff]  ;;  %v94_v11 = vld [vmem:[%s1386_s1 + $0x208] sm:$0xff]  ;;  %v199_v16 = vcombine.high %v197_v8, %v197_v8 }
  0x3b   :  { %776 = vmatpush3.msra.mxu0 %v98_v56  ;;  %811 = vmatpush3.msra.mxu1 %v130_v57  ;;  %v127_v7 = vld [vmem:[%s1386_s1 + $0x310] sm:$0xff]  ;;  %v126_v51 = vld [vmem:[%s1386_s1 + $0x308] sm:$0xff]  ;;  %v109_v12 = vld [vmem:[%s1386_s1 + $0x280] sm:$0xff] }
  0x3c   :  { %777 = vmatprep.subr.mxu0 %v113_v58  ;;  %812 = vmatprep.subr.mxu1 %v145_v59  ;;  %v141_v13 = vld [vmem:[%s1386_s1 + $0x380] sm:$0xff]  ;;  %v496_v18 = vld [vmem:[%s1388_s3 + $0x38] sm:$0xff]  ;;  %v495_v20 = vld [vmem:[%s1388_s3 + $0x30] sm:$0xff] }
  0x3d   :  { %778 = vmatpush3.msra.mxu0 %v97_v60  ;;  %813 = vmatpush3.msra.mxu1 %v129_v61  ;;  %v93_v15 = vld [vmem:[%s1386_s1 + $0x200] sm:$0xff]  ;;  %v494_v21 = vld [vmem:[%s1388_s3 + $0x28] sm:$0xff]  ;;  %v492_v23 = vld [vmem:[%s1388_s3 + $0x18] sm:$0xff] }
  0x3e   :  { %779 = vmatprep.subr.mxu0 %v112_v63  ;;  %814 = vmatprep.subr.mxu1 %v144_v0  ;;  %v125_v17 = vld [vmem:[%s1386_s1 + $0x300] sm:$0xff]  ;;  %v491_v24 = vld [vmem:[%s1388_s3 + $0x10] sm:$0xff]  ;;  %v490_v25 = vld [vmem:[%s1388_s3 + $0x8] sm:$0xff]  ;;  %s672_s1 = sshll.u32 %s900_s9, 4  ;;  %s673_s1 = int_to_ptr.vmem [resolvable:$true] %s672_s1 }
  0x3f   :  { %780 = vmatpush3.msra.mxu0 %v96_v1  ;;  %815 = vmatpush3.msra.mxu1 %v128_v2  ;;  %v493_v22 = vld [vmem:[%s1388_s3 + $0x20] sm:$0xff]  ;;  %v582_v27 = vld [vmem:[%s1390_s5 + $0x18] sm:$0xff]  ;;  %v581_v46 = vld [vmem:[%s1390_s5 + $0x10] sm:$0xff]  ;;  %p880_p1 = scmp.lt.s32.totalorder %s673_s1, %s673_s1 }
  0x40   :  { %781 = vmatprep.subr.mxu0 %v111_v3  ;;  %816 = vmatprep.subr.mxu1 %v143_v4  ;;  %v489_v26 = vld [vmem:[%s1388_s3] sm:$0xff]  ;;  %v580_v47 = vld [vmem:[%s1390_s5 + $0x8] sm:$0xff] }
  0x41   :  { %782 = vmatpush3.msra.mxu0 %v95_v6  ;;  %817 = vmatpush3.msra.mxu1 %v127_v7  ;;  %v680_v32 = vld [vmem:[%s1387_s2] ss:$0 sm:$0xff] }
  0x42   :  { %783 = vmatprep.subr.mxu0 %v110_v9  ;;  %818 = vmatprep.subr.mxu1 %v142_v10  ;;  %v579_v48 = vld [vmem:[%s1390_s5] sm:$0xff]  ;;  %s875_s5 = scalar_lea.vmem %s673_s1, 32 }
  0x43   :  { %784 = vmatpush3.msra.mxu0 %v94_v11  ;;  %819 = vmatpush3.msra.mxu1 %v126_v51  ;;  %v681_v49 = vld [vmem:[%s1389_s4] ss:$0 sm:$0xff]  ;;  %p876_p0 = scmp.ne.s32.totalorder %s673_s1, %s875_s5  ;;  %p881_p2 = scmp.lt.s32.totalorder %s875_s5, %s875_s5 }
  0x44   :  { %785 = vmatprep.subr.mxu0 %v109_v12  ;;  %820 = vmatprep.subr.mxu1 %v141_v13  ;;  %v683_v55 = vld [vmem:[%s1391_s6] ss:$0 sm:$0xff] }
  0x45   :  { %786 = vmatpush3.msra.mxu0 %v93_v15  ;;  %412 = vmatprep.mubr.f32.mxu0 %v198_v14  ;;  %p882_p3 = por %p881_p2, %p880_p1 }
  0x46   :  { %821 = vmatpush3.msra.mxu1 %v125_v17  ;;  %482 = vmatprep.mubr.f32.mxu1 %v199_v16 }
  0x47   :  { %413 = vmatmul.mubr.f32.vlgmr.msra.gmra.mxu0 %v190_v5  ;;  %483 = vmatmul.mubr.f32.vlgmr.msra.gmra.mxu1 %v197_v8  ;;  %p883_p4 = pnand %p882_p3, %p876_p0 }
  0x48   :  { %839 = vmatprep.subr.mxu0 %v898_v19  ;;  %858 = vmatprep.subr.mxu1 %v898_v19 }
  0x49   :  { %840 = vmatpush3.msra.mxu0 %v496_v18  ;;  %855 = vmatprep.mubr.msk.f32.mxu0 %vm899_vm0, %v898_v19 }
  0x4a   :  { %841 = vmatprep.subr.mxu0 %v898_v19  ;;  %866 = vmatprep.mubr.msk.f32.mxu1 %vm899_vm0, %v898_v19 }
  0x4b   :  { %842 = vmatpush3.msra.mxu0 %v495_v20  ;;  %859 = vmatpush3.msra.mxu1 %v582_v27 }
  0x4c   :  { %843 = vmatprep.subr.mxu0 %v898_v19  ;;  %860 = vmatprep.subr.mxu1 %v898_v19 }
  0x4d   :  { %844 = vmatpush3.msra.mxu0 %v494_v21  ;;  %861 = vmatpush3.msra.mxu1 %v581_v46 }
  0x4e   :  { %845 = vmatprep.subr.mxu0 %v898_v19  ;;  %862 = vmatprep.subr.mxu1 %v898_v19 }
  0x4f   :  { %846 = vmatpush3.msra.mxu0 %v493_v22  ;;  %863 = vmatpush3.msra.mxu1 %v580_v47 }
  0x50   :  { %847 = vmatprep.subr.mxu0 %v898_v19  ;;  %864 = vmatprep.subr.mxu1 %v898_v19 }
  0x51   :  { %848 = vmatpush3.msra.mxu0 %v492_v23  ;;  %865 = vmatpush3.msra.mxu1 %v579_v48 }
  0x52   :  { %849 = vmatprep.subr.mxu0 %v898_v19 }
  0x53   :  { %850 = vmatpush3.msra.mxu0 %v491_v24 }
  0x54   :  { %851 = vmatprep.subr.mxu0 %v898_v19 }
  0x55   :  { %852 = vmatpush3.msra.mxu0 %v490_v25 }
  0x56   :  { %853 = vmatprep.subr.mxu0 %v898_v19 }
  0x57   :  { %854 = vmatpush3.msra.mxu0 %v489_v26 }
  0xe4   :  { %v717_v28 = vpop.f32.mrf.mxu0 }
  0xe6   :  { %v752_v29 = vpop.f32.mrf.mxu1  ;;  %v718_v30 = vpop.f32.mrf.mxu0 }
  0xe7   :  { %v719_v31 = vadd.f32 %v718_v30, %v717_v28 }
  0xe8   :  { %v753_v33 = vpop.f32.mrf.mxu1 }
  0xe9   :  { %v275_v34 = vadd.f32 %v719_v31, %v680_v32  ;;  %v754_v35 = vadd.f32 %v753_v33, %v752_v29 }
  0xeb   :  { %v345_v40 = vadd.f32 %v754_v35, %v275_v34 }
 0x107   :  { %v787_v36 = vpop.f32.mrf.mxu0  ;;  %v822_v37 = vpop.f32.mrf.mxu1 }
 0x109   :  { %v788_v38 = vpop.f32.mrf.mxu0  ;;  %v823_v39 = vpop.f32.mrf.mxu1 }
 0x10a   :  { %v789_v41 = vadd.f32 %v788_v38, %v787_v36  ;;  %v824_v43 = vadd.f32 %v823_v39, %v822_v37 }
 0x10c   :  { %v415_v42 = vadd.f32 %v789_v41, %v345_v40 }
 0x10e   :  { %v485_v44 = vadd.f32 %v824_v43, %v415_v42 }
 0x110   :  { %v488_v45 = vmax.f32 %v485_v44, 0.0 }
 0x112   :  { %856 = vmatmul.mubr.msk.f32.vlgmr.msra.gmra.mxu0 %vm504_vm1, %v488_v45 }
 0x1d2   :  { %v574_v50 = vpop.f32.mrf.mxu0 }
 0x1d3   :  { %v575_v52 = vadd.f32 %v681_v49, %v574_v50 }
 0x1d4   :  { %v857_v53 = vpop.f32.mrf.mxu0 }
 0x1d5   :  { %v578_v54 = vmax.f32 %v575_v52, 0.0 }
 0x1d7   :  { %867 = vmatmul.mubr.msk.f32.vlgmr.msra.gmra.mxu1 %vm590_vm2, %v578_v54 }
 0x297   :  { %v660_v56 = vpop.f32.mrf.mxu1 }
 0x298   :  { %v661_v57 = vadd.f32 %v683_v55, %v660_v56 }
 0x299   :  { %v868_v58 = vpop.f32.mrf.mxu1 }
 0x29a   :  { %665 = vst.msk [vmem:[#allocation2] sm:$0x3] %vm664_vm3, %v661_v57 }
 0x29b   :  { %886 = shalt.err (!%p883_p4)
}
 0x29c   :  { %675 = dma.vmem_to_hbm [thread:$0]  %s673_s1, 32, %s1392_s7, [#allocation3]  }
 0x29d   :  { %895 = dma.done.wait [#allocation3], 32  }
 0x29e   :  { %896 = vsyncadd [#allocation3], 4294967264 }
 0x29f   :  { %679 = vsyncpa [#allocation3], 1 }

</bundles_post_ra>
